<compile_context>
chip_gen: v7x
topology: tpu7x:2x2x1
jax: 0.10.0
libtpu: 0.0.40
codegen_flags: <defaults>
</compile_context>

<pallas_src>
import functools
import math

import jax
import jax.numpy as jnp
from jax.experimental import pallas as pl
from jax.experimental.pallas import tpu as pltpu


def _cdiv(a, b):
    return (a + b - 1) // b


def _round_up(x, m):
    return ((x + m - 1) // m) * m


# ---------------------------------------------------------------------------
# Fused kernel:  out = LayerNorm_groups( x @ Wc + bc )
#   x:     (rt, L)      Wc: (L, ct)      bc/gamma/beta: (1, ct)
#   g:     (ct, ct)     block-diagonal ones/D (group-mean operator)
#   out:   (rt, ct)
# Wc/bc are pre-centered per D-wide group, so z is already mean-free.
# ---------------------------------------------------------------------------
def fused_decoder_ln_kernel(x_ref, wc_ref, bc_ref, g_ref, gamma_ref, beta_ref,
                            o_ref, *, eps):
    # grow_sequence ∘ grow_tokens folded into a single MXU matmul; result is
    # already centered per LayerNorm group (mean folded into Wc/bc).
    zc = jnp.dot(x_ref[...], wc_ref[...],
                 preferred_element_type=jnp.float32) + bc_ref[...]

    # Per-group (biased) variance via one MXU matmul against the block-diagonal
    # ones/D matrix: lane-dense, no cross-lane reshapes or masked reductions.
    var = jnp.dot(zc * zc, g_ref[...], preferred_element_type=jnp.float32)

    normed = zc * jax.lax.rsqrt(var + eps)
    o_ref[...] = (normed * gamma_ref[...] + beta_ref[...]).astype(o_ref.dtype)


# ---------------------------------------------------------------------------
# One-time parameter folding (hoist out of the forward pass)
# ---------------------------------------------------------------------------
def fold_decoder_params(params, *, n_positions, d_model, col_tile=None,
                        matmul_dtype=jnp.float32):
    """Fold grow_sequence, grow_tokens and the LayerNorm mean into a single
    (L, P*D) weight / (1, P*D) bias, plus the small group-sum matrix. Call once
    at param-load time."""
    P, D = n_positions, d_model
    PD = P * D
    HIGH = jax.lax.Precision.HIGHEST

    w1 = params["grow_sequence_w"].astype(jnp.float32)   # (100*P, L)
    b1 = params["grow_sequence_b"].astype(jnp.float32)   # (100*P,)
    w2 = params["grow_tokens_w"].astype(jnp.float32)     # (D, 100)
    b2 = params["grow_tokens_b"].astype(jnp.float32)     # (D,)
    gamma = params["ln_gamma"].astype(jnp.float32)        # (D,)
    beta = params["ln_beta"].astype(jnp.float32)          # (D,)
    L = w1.shape[1]

    # Fold the two Linears:  Wc[l, p, d] = sum_k W1[p*100+k, l] * W2[d, k]
    w1t = w1.T.reshape(L, P, 100)
    wc = jnp.einsum("lpk,dk->lpd", w1t, w2, precision=HIGH)            # (L,P,D)
    bc = jnp.einsum("pk,dk->pd", b1.reshape(P, 100), w2,
                    precision=HIGH) + b2[None, :]                      # (P,D)

    # Fold the per-group LayerNorm mean: center each D-wide group so the kernel
    # never computes/subtracts the mean (kills one MXU matmul + a VPU subtract).
    wc = (wc - wc.mean(axis=-1, keepdims=True)).reshape(L, PD)
    bc = (bc - bc.mean(axis=-1, keepdims=True)).reshape(1, PD)

    gamma_t = jnp.tile(gamma, (P,)).reshape(1, PD)
    beta_t = jnp.tile(beta, (P,)).reshape(1, PD)

    # Column tile: multiple of 128 (lanes) AND of D (group boundaries), so the
    # same small (ct, ct) block-diagonal matrix serves every column block.
    if col_tile is None:
        ct = (128 * D) // math.gcd(128, D)                 # lcm(128, D)
        if ct > PD or PD % ct != 0:
            ct = PD                                        # fall back: one block
        else:
            # Grow (fewer grid steps) but keep >= 2 column tiles when possible
            # so a 2-TensorCore chip (v7x) has parallel work even at tiny B,
            # and cap at 256 lanes to stay well inside scoped VMEM.
            cap = min(256, PD // 2) if PD >= 2 * ct else PD
            while ct * 2 <= cap and PD % (ct * 2) == 0:
                ct *= 2
    else:
        ct = col_tile
    assert ct % D == 0, "column tile must align with LayerNorm groups"

    # Block-diagonal ones/D: (zc^2 @ g) = per-group variance, broadcast back
    # across each D-wide group.  Only (ct, ct) — independent of P*D.
    g = jnp.kron(jnp.eye(ct // D, dtype=jnp.float32),
                 jnp.full((D, D), 1.0 / D, dtype=jnp.float32))

    return dict(wc=wc.astype(matmul_dtype), bc=bc, g=g,
                gamma=gamma_t, beta=beta_t, L=L, P=P, D=D, ct=ct)


# ---------------------------------------------------------------------------
# Forward wrapper
# ---------------------------------------------------------------------------
def latent_decoder_match_encoder(latent, folded, *, layer_norm_eps=1e-9,
                                 row_tile=2048, out_dtype=jnp.float32):
    """latent: (B, latent_size) -> (B, n_positions, d_model)."""
    B, L = latent.shape
    P, D, ct = folded["P"], folded["D"], folded["ct"]
    PD = P * D
    assert L == folded["L"]

    wc, bc, g = folded["wc"], folded["bc"], folded["g"]
    gamma_t, beta_t = folded["gamma"], folded["beta"]

    n_col = _cdiv(PD, ct)

    # Row tiling: no host-side pad/slice — Pallas masks the ragged edge block.
    if B <= 8:
        rt, n_row = B, 1                     # block == full batch dim
    else:
        n_row = _cdiv(B, row_tile)
        if n_col == 1 and n_row == 1 and B >= 16:
            n_row = 2                        # keep v7x's 2nd TensorCore busy
        rt = _round_up(_cdiv(B, n_row), 8)   # minimize last-tile waste
        n_row = _cdiv(B, rt)

    x = latent.astype(wc.dtype)

    kernel = functools.partial(fused_decoder_ln_kernel, eps=layer_norm_eps)

    out = pl.pallas_call(
        kernel,
        out_shape=jax.ShapeDtypeStruct((B, PD), out_dtype),
        grid_spec=pltpu.PrefetchScalarGridSpec(
            num_scalar_prefetch=0,
            grid=(n_row, n_col),
            in_specs=[
                pl.BlockSpec((rt, L), lambda i, j: (i, 0)),   # latent rows
                pl.BlockSpec((L, ct), lambda i, j: (0, j)),   # fused weight cols
                pl.BlockSpec((1, ct), lambda i, j: (0, j)),   # fused bias cols
                pl.BlockSpec((ct, ct), lambda i, j: (0, 0)),  # group-sum matrix
                pl.BlockSpec((1, ct), lambda i, j: (0, j)),   # tiled gamma
                pl.BlockSpec((1, ct), lambda i, j: (0, j)),   # tiled beta
            ],
            out_specs=pl.BlockSpec((rt, ct), lambda i, j: (i, j)),
        ),
        compiler_params=pltpu.CompilerParams(
            dimension_semantics=("parallel", "parallel"),
            vmem_limit_bytes=32 * 1024 * 1024,
        ),
    )(x, wc, bc, g, gamma_t, beta_t)

    return out.reshape(B, P, D)


# ---------------------------------------------------------------------------
# Pure-JAX reference (un-fused, matches the PyTorch module)
# ---------------------------------------------------------------------------
def reference_forward(latent, params, *, n_positions, d_model,
                      layer_norm_eps=1e-9):
    HIGH = jax.lax.Precision.HIGHEST
    B = latent.shape[0]
    y = jnp.dot(latent, params["grow_sequence_w"].T, precision=HIGH) \
        + params["grow_sequence_b"]
    y = y.reshape(B, n_positions, 100)
    z = jnp.dot(y, params["grow_tokens_w"].T, precision=HIGH) \
        + params["grow_tokens_b"]
    mean = jnp.mean(z, axis=-1, keepdims=True)
    var = jnp.mean((z - mean) ** 2, axis=-1, keepdims=True)
    normed = (z - mean) / jnp.sqrt(var + layer_norm_eps)
    return normed * params["ln_gamma"] + params["ln_beta"]


if __name__ == "__main__":
    # Small config consistent with the module:
    #   latent_size=32, n_positions=8, d_model=32, model_type='funnel'
    B = 2
    latent_size = 32
    n_positions = 8
    d_model = 32
    eps = 1e-9

    key = jax.random.PRNGKey(0)
    k_lat, k_w1, k_b1, k_w2, k_b2, k_lat2 = jax.random.split(key, 6)

    latent = jax.random.normal(k_lat, (B, latent_size), dtype=jnp.float32)

    params = {
        # nn.Linear(latent_size, 100*n_positions): weight (out, in), bias (out,)
        "grow_sequence_w": 0.02 * jax.random.normal(
            k_w1, (100 * n_positions, latent_size), dtype=jnp.float32),
        "grow_sequence_b": 0.01 * jax.random.normal(
            k_b1, (100 * n_positions,), dtype=jnp.float32),
        # nn.Linear(100, d_model)
        "grow_tokens_w": 0.02 * jax.random.normal(
            k_w2, (d_model, 100), dtype=jnp.float32),
        "grow_tokens_b": 0.01 * jax.random.normal(
            k_b2, (d_model,), dtype=jnp.float32),
        # nn.LayerNorm(d_model, eps): weight=1, bias=0 at init
        "ln_gamma": jnp.ones((d_model,), dtype=jnp.float32),
        "ln_beta": jnp.zeros((d_model,), dtype=jnp.float32),
    }

    # One-time constant folding (hoisted out of the forward pass).
    folded_f32 = fold_decoder_params(
        params, n_positions=n_positions, d_model=d_model)

    # --- test 1: toy batch (single row tile, 2 parallel column tiles) --------
    out = latent_decoder_match_encoder(
        latent, folded_f32, layer_norm_eps=eps)
    out = jax.block_until_ready(out)
    ref = reference_forward(
        latent, params, n_positions=n_positions, d_model=d_model,
        layer_norm_eps=eps)
    assert out.shape == (B, n_positions, d_model), out.shape
    # 1e-4 tolerance: the algebraic weight/mean fusion reassociates f32 sums.
    assert jnp.allclose(out, ref, atol=1e-4, rtol=1e-4), \
        float(jnp.max(jnp.abs(out - ref)))

    # --- test 2: non-divisible batch exercises the ragged row-tiled grid -----
    B2 = 37
    latent2 = jax.random.normal(k_lat2, (B2, latent_size), dtype=jnp.float32)
    out2 = latent_decoder_match_encoder(
        latent2, folded_f32, layer_norm_eps=eps, row_tile=16)
    out2 = jax.block_until_ready(out2)
    ref2 = reference_forward(
        latent2, params, n_positions=n_positions, d_model=d_model,
        layer_norm_eps=eps)
    assert out2.shape == (B2, n_positions, d_model), out2.shape
    assert jnp.allclose(out2, ref2, atol=1e-4, rtol=1e-4), \
        float(jnp.max(jnp.abs(out2 - ref2)))

    # --- test 3: bf16 matmul operands + bf16 output (looser tolerance) -------
    folded_bf16 = fold_decoder_params(
        params, n_positions=n_positions, d_model=d_model,
        matmul_dtype=jnp.bfloat16)
    out3 = latent_decoder_match_encoder(
        latent2, folded_bf16, layer_norm_eps=eps, out_dtype=jnp.bfloat16)
    out3 = jax.block_until_ready(out3)
    assert out3.dtype == jnp.bfloat16
    assert jnp.allclose(out3.astype(jnp.float32), ref2, atol=1e-1, rtol=1e-1), \
        float(jnp.max(jnp.abs(out3.astype(jnp.float32) - ref2)))

    print("KERNEL_OK")
</pallas_src>

<mosaic_0001>
module attributes {stable_mosaic.version = 11 : i64} {
  func.func @fused_decoder_ln_kernel(%arg0: i32, %arg1: i32, %arg2: memref<2x32xf32, #tpu.memory_space<vmem>>, %arg3: memref<32x128xf32, #tpu.memory_space<vmem>>, %arg4: memref<1x128xf32, #tpu.memory_space<vmem>>, %arg5: memref<128x128xf32, #tpu.memory_space<vmem>>, %arg6: memref<1x128xf32, #tpu.memory_space<vmem>>, %arg7: memref<1x128xf32, #tpu.memory_space<vmem>>, %arg8: memref<2x128xf32, #tpu.memory_space<vmem>>) attributes {dimension_semantics = [#tpu.dimension_semantics<parallel>, #tpu.dimension_semantics<parallel>], iteration_bounds = array<i64: 1, 2>, scalar_prefetch = 0 : i64, scratch_operands = 0 : i64, tpu.core_type = #tpu.core_type<tc>, window_params = [{transform_indices = @transform_0, window_bounds = array<i64: 2, 32>}, {transform_indices = @transform_1, window_bounds = array<i64: 32, 128>}, {transform_indices = @transform_2, window_bounds = array<i64: 1, 128>}, {pipeline_mode = #tpu.pipeline_mode<synchronous>, transform_indices = @transform_3, window_bounds = array<i64: 128, 128>}, {transform_indices = @transform_4, window_bounds = array<i64: 1, 128>}, {transform_indices = @transform_5, window_bounds = array<i64: 1, 128>}, {transform_indices = @transform_6, window_bounds = array<i64: 2, 128>}]} {
    %c0 = arith.constant 0 : index
    %c0_0 = arith.constant 0 : index
    %0 = vector.load %arg2[%c0, %c0_0] : memref<2x32xf32, #tpu.memory_space<vmem>>, vector<2x32xf32>
    %c0_1 = arith.constant 0 : index
    %c0_2 = arith.constant 0 : index
    %1 = vector.load %arg3[%c0_1, %c0_2] : memref<32x128xf32, #tpu.memory_space<vmem>>, vector<32x128xf32>
    %cst = arith.constant dense<0.000000e+00> : vector<2x128xf32>
    %2 = tpu.matmul %0, %1, %cst {dimension_numbers = #tpu.dot_dimension_numbers<[1], [0], [0], [1], [0, 0, 1, 1], [], []>} : vector<2x32xf32>, vector<32x128xf32>, vector<2x128xf32> -> vector<2x128xf32>
    %c0_3 = arith.constant 0 : index
    %c0_4 = arith.constant 0 : index
    %3 = vector.load %arg4[%c0_3, %c0_4] : memref<1x128xf32, #tpu.memory_space<vmem>>, vector<1x128xf32>
    %4 = vector.broadcast %3 : vector<1x128xf32> to vector<2x128xf32>
    %5 = arith.addf %2, %4 : vector<2x128xf32>
    %6 = arith.mulf %5, %5 : vector<2x128xf32>
    %c0_5 = arith.constant 0 : index
    %c0_6 = arith.constant 0 : index
    %7 = vector.load %arg5[%c0_5, %c0_6] : memref<128x128xf32, #tpu.memory_space<vmem>>, vector<128x128xf32>
    %cst_7 = arith.constant dense<0.000000e+00> : vector<2x128xf32>
    %8 = tpu.matmul %6, %7, %cst_7 {dimension_numbers = #tpu.dot_dimension_numbers<[1], [0], [0], [1], [0, 0, 1, 1], [], []>} : vector<2x128xf32>, vector<128x128xf32>, vector<2x128xf32> -> vector<2x128xf32>
    %cst_8 = arith.constant 9.99999971E-10 : f32
    %9 = vector.broadcast %cst_8 : f32 to vector<2x128xf32>
    %10 = arith.addf %8, %9 : vector<2x128xf32>
    %11 = math.rsqrt %10 : vector<2x128xf32>
    %12 = arith.mulf %5, %11 : vector<2x128xf32>
    %c0_9 = arith.constant 0 : index
    %c0_10 = arith.constant 0 : index
    %13 = vector.load %arg6[%c0_9, %c0_10] : memref<1x128xf32, #tpu.memory_space<vmem>>, vector<1x128xf32>
    %14 = vector.broadcast %13 : vector<1x128xf32> to vector<2x128xf32>
    %15 = arith.mulf %12, %14 : vector<2x128xf32>
    %c0_11 = arith.constant 0 : index
    %c0_12 = arith.constant 0 : index
    %16 = vector.load %arg7[%c0_11, %c0_12] : memref<1x128xf32, #tpu.memory_space<vmem>>, vector<1x128xf32>
    %17 = vector.broadcast %16 : vector<1x128xf32> to vector<2x128xf32>
    %18 = arith.addf %15, %17 : vector<2x128xf32>
    %c0_13 = arith.constant 0 : index
    %c0_14 = arith.constant 0 : index
    %19 = vector.load %arg8[%c0_13, %c0_14] : memref<2x128xf32, #tpu.memory_space<vmem>>, vector<2x128xf32>
    tpu.vector_store %arg8[%c0_13, %c0_14], %18 {strides = array<i32>} : memref<2x128xf32, #tpu.memory_space<vmem>>, vector<2x128xf32>,
    return
  }
  func.func @transform_0(%arg0: i32, %arg1: i32) -> (i32, i32) {
    %c0_i32 = arith.constant 0 : i32
    %c0_i32_0 = arith.constant 0 : i32
    return %arg0, %c0_i32 : i32, i32
  }
  func.func @transform_1(%arg0: i32, %arg1: i32) -> (i32, i32) {
    %c0_i32 = arith.constant 0 : i32
    %c0_i32_0 = arith.constant 0 : i32
    return %c0_i32, %arg1 : i32, i32
  }
  func.func @transform_2(%arg0: i32, %arg1: i32) -> (i32, i32) {
    %c0_i32 = arith.constant 0 : i32
    %c0_i32_0 = arith.constant 0 : i32
    return %c0_i32, %arg1 : i32, i32
  }
  func.func @transform_3(%arg0: i32, %arg1: i32) -> (i32, i32) {
    %c0_i32 = arith.constant 0 : i32
    %c0_i32_0 = arith.constant 0 : i32
    %c0_i32_1 = arith.constant 0 : i32
    return %c0_i32, %c0_i32_0 : i32, i32
  }
  func.func @transform_4(%arg0: i32, %arg1: i32) -> (i32, i32) {
    %c0_i32 = arith.constant 0 : i32
    %c0_i32_0 = arith.constant 0 : i32
    return %c0_i32, %arg1 : i32, i32
  }
  func.func @transform_5(%arg0: i32, %arg1: i32) -> (i32, i32) {
    %c0_i32 = arith.constant 0 : i32
    %c0_i32_0 = arith.constant 0 : i32
    return %c0_i32, %arg1 : i32, i32
  }
  func.func @transform_6(%arg0: i32, %arg1: i32) -> (i32, i32) {
    %c0_i32 = arith.constant 0 : i32
    return %arg0, %arg1 : i32, i32
  }
}

</mosaic_0001>

<bundles_post_ra>
// kernel: tpu_custom_call.1
= control target key start
LH: loop header
LB: loop body
LE: loop exit
PB: predicated region body
PF: predicated region fallthrough
CT: control target
= control target key end

     0   :  { %11 = vsyncpa [#allocation3], 0  ;;  %s1404_s0 = inlined_call_operand.hbm [shape: f32[2,32], index: 0, kind: input, shape index: {}]   ;;  %s1405_s1 = inlined_call_operand.hbm [shape: f32[32,256], index: 1, kind: input, shape index: {}]   ;;  %s1406_s2 = inlined_call_operand.vmem [shape: f32[1,256], index: 2, kind: input, shape index: {}]   ;;  %s1407_s3 = inlined_call_operand.hbm [shape: f32[128,128], index: 3, kind: input, shape index: {}]   ;;  %s1408_s4 = inlined_call_operand.vmem [shape: f32[1,256], index: 4, kind: input, shape index: {}]   ;;  %s1409_s5 = inlined_call_operand.vmem [shape: f32[1,256], index: 5, kind: input, shape index: {}]   ;;  %s1410_s6 = inlined_call_operand.hbm [shape: f32[2,256], index: 6, kind: output, shape index: {}]  }
   0x1   :  { %12 = vsyncpa [#allocation6], 0 }
   0x2   :  { %14 = vsyncpa [#allocation6 + $0x1], 0 }
   0x3   :  { %15 = vsyncpa [#allocation4], 0 }
   0x4   :  { %17 = vsyncpa [#allocation4 + $0x1], 0  ;;  %s1130_s21 = smov 0   ;;  %s1132_s22 = smov 0  }
   0x5   :  { %s1134_s23 = smov 0   ;;  %s1136_s24 = smov 0  }
   0x6   :  { %s1138_s25 = smov 0   ;;  %s1140_s26 = smov 0  }
   0x7 LB: > { %1419 = sst [smem:[#allocation13_spill]] %s1063_s21  ;;  %s1161_s27 = sadd.s32 4294967295, %s1083_s26   ;;  %s1083_s26 = sphi %s1140_s26, %s23_s26   ;;  %s1079_s25 = sphi %s1138_s25, %s1447_s25   ;;  %s1075_s24 = sphi %s1136_s24, %s1446_s24   ;;  %s1071_s23 = sphi %s1134_s23, %s1445_s23   ;;  %s1067_s22 = sphi %s1132_s22, %s1444_s22   ;;  %s1063_s21 = sphi %s1130_s21, %s1443_s21  }
   0x8   : > { %s698_s28 = sadd.s32 4294967294, %s1083_s26   ;;  %p75_p0 = scmp.ne.s32.totalorder %s1071_s23, %s1067_s22 }
   0x9   : > { %p76_p1 = scmp.eq.s32.totalorder %s1083_s26, 0  ;;  %p81_p2 = scmp.ne.s32.totalorder %s1067_s22, %s1063_s21 }
   0xa   : > { %p1411_p3 = scmp.eq.s32.totalorder %s1161_s27, 0  ;;  %p206_p4 = scmp.eq.s32.totalorder %s1161_s27, 1 }
   0xb   : > { %p1172_p5 = por %p76_p1, %p75_p0  ;;  %p212_p6 = scmp.eq.s32.totalorder %s698_s28, 1 }
   0xc   : > { %p1178_p7 = por %p1411_p3, %p81_p2  ;;  %p1182_p8 = por %p206_p4, %p75_p0 }
   0xd   : > { %p1186_p9 = por %p212_p6, %p81_p2  ;;  %p699_p10 = scmp.ge.s32.totalorder %s1083_s26, 1 }
   0xe   : > { %s1421_s7 = scalar_select %p1178_p7, 1, 0 }
   0xf   : > { %s1422_s8 = scalar_select %p1182_p8, 1, 0 }
  0x10   : > { %s1423_s9 = scalar_select %p1186_p9, 1, 0 }
  0x11   : > { %p219_p11 = scmp.lt.s32.totalorder %s1083_s26, 3  ;;  %s1085_s11 = smov [#allocation7]  }
  0x12   : > { %1424 = sst [smem:[#allocation14_spill]] %s1423_s9  ;;  %s244_s12 = sshll.u32 %s1085_s11, 4  ;;  %s1196_s12 = int_to_ptr.vmem [resolvable:$true] %s244_s12 }
  0x13   : > { %p1192_p12 = pnand %p699_p10, %p219_p11  ;;  %p845_p1 = scmp.lt.s32.totalorder %s1083_s26, 2 }
  0x14   : > { %s1086_s15 = smov [#allocation2]   ;;  %s907_s19 = scalar_lea.hbm %s1407_s3, 2048 }
  0x15   : > { %s1425_s10 = scalar_select %p1192_p12, 1, 0 }
  0x16   : > { %p828_p13 = pneg %p1192_p12  ;;  %p1210_p4 = pnand %p845_p1, %p1172_p5 }
  0x17   : > { %s234_s16 = sshll.u32 %s1086_s15, 4  ;;  %p908_p6 = scmp.ne.s32.totalorder %s1407_s3, %s907_s19  ;;  %s235_s16 = int_to_ptr.vmem [resolvable:$true] %s234_s16 }
  0x18   : > { %p1204_p2 = pnand %p828_p13, %p1411_p3  ;;  %p914_p5 = scmp.lt.u32.totalorder %s907_s19, %s1407_s3 }
  0x19   : > { %s1427_s14 = scalar_select %p1210_p4, 1, 0 }
  0x1a   : > { %p909_p10 = pneg %p1204_p2 }
  0x1c   : > { %p910_p11 = pnand %p909_p10, %p908_p6 }
  0x1e   : > { %p911_p13 = pneg %p910_p11 }
  0x20   : > { %p916_p1 = pnand %p914_p5, %p911_p13 }
  0x22   : > { %919 = shalt.err (!%p916_p1)
}
  0x23   : > { %s920_s15 = scalar_lea.vmem %s1196_s12, 2048  ;;  %p928_p8 = scmp.lt.s32.totalorder %s1196_s12, %s1196_s12 }
  0x24   : > { %p921_p0 = scmp.ne.s32.totalorder %s1196_s12, %s920_s15  ;;  %p929_p6 = scmp.lt.s32.totalorder %s920_s15, %s920_s15 }
  0x26   : > { %p923_p3 = pnand %p921_p0, %p909_p10  ;;  %p930_p11 = por %p929_p6, %p928_p8 }
  0x28   : > { %p924_p9 = pneg %p923_p3 }
  0x2a   : > { %p931_p7 = pnand %p930_p11, %p924_p9 }
  0x2c   : > { %934 = shalt.err (!%p931_p7)
}
  0x2d   : > { %s1418_s17 = smov 128   ;;  %s1088_s18 = smov 8  }
  0x2e   : > { %834 = dma.hbm_to_vmem [thread:$0]  (!%p1204_p2), %s1407_s3, 2048, %s1196_s12, [#allocation6], %s1418_s17, %s1418_s17, %s1088_s18  }
  0x2f   : > { %s935_s11 = scalar_lea.hbm %s1404_s0, 32 }
  0x30   : > { %p936_p3 = scmp.ne.s32.totalorder %s1404_s0, %s935_s11  ;;  %p942_p9 = scmp.lt.u32.totalorder %s935_s11, %s1404_s0 }
  0x32   : > { %p938_p7 = pnand %p936_p3, %p909_p10 }
  0x34   : > { %p939_p8 = pneg %p938_p7 }
  0x36   : > { %p944_p0 = pnand %p942_p9, %p939_p8 }
  0x38   : > { %947 = shalt.err (!%p944_p0)
}
  0x39   : > { %s948_s12 = scalar_lea.vmem %s235_s16, 32  ;;  %p956_p6 = scmp.lt.s32.totalorder %s235_s16, %s235_s16 }
  0x3a   : > { %p949_p13 = scmp.ne.s32.totalorder %s235_s16, %s948_s12  ;;  %p957_p11 = scmp.lt.s32.totalorder %s948_s12, %s948_s12 }
  0x3c   : > { %p951_p5 = pnand %p949_p13, %p909_p10  ;;  %p958_p12 = por %p957_p11, %p956_p6 }
  0x3e   : > { %p952_p1 = pneg %p951_p5 }
  0x40   : > { %p959_p4 = pnand %p958_p12, %p952_p1 }
  0x42   : > { %962 = shalt.err (!%p959_p4)
}
  0x43   : > { %831 = dma.hbm_to_vmem [thread:$0]  (!%p1204_p2), %s1404_s0, 32, %s235_s16, [#allocation3]  }
  0x44   : > { %s258_s21 = sand.u32 1, %s1083_s26   ;;  %s32_s9 = sadd.s32 1, %s1079_s25 }
  0x45   : > { %s260_s20 = sand.u32 1, %s1071_s23   ;;  %p33_p10 = scmp.ge.s32.totalorder %s32_s9, 2 }
  0x46   : > { %s703_s28 = sshll.u32 %s260_s20, 5  ;;  %s704_s30 = sshll.u32 %s1079_s25, 7 }
  0x47   : > { %s1449_s9 = smov (%p33_p10, %s32_s9), 0  ;;  %s1273_s15 = scalar_lea.hbm %s1405_s1, %s704_s30 }
  0x48   : > { %s262_s16 = scalar_lea.vmem [#allocation5], %s703_s28  ;;  %s65_s29 = ssub.s32 %s1079_s25, %s1449_s9 }
  0x49   : > { %s268_s12 = sshll.u32 %s262_s16, 4  ;;  %p1279_p12 = scmp.eq.s32.totalorder %s65_s29, 0  ;;  %s1277_s12 = int_to_ptr.vmem [resolvable:$true] %s268_s12 }
  0x4a   : > { %s1283_s20 = scalar_lea.sflag [#allocation6], %s258_s21  ;;  %s963_s17 = scalar_lea.hbm %s1273_s15, 512 }
  0x4b   : > { %p964_p2 = scmp.ne.s32.totalorder %s1273_s15, %s963_s17  ;;  %p1429_p4 = scmp.ne.s32.totalorder %s1427_s14, 0 }
  0x4c   : > { %s968_s13 = scalar_lea.hbm %s1405_s1, 1024  ;;  %p969_p9 = scmp.lt.u32.totalorder %s1273_s15, %s1405_s1 }
  0x4d   : > { %p965_p3 = pneg %p1429_p4  ;;  %p970_p0 = scmp.lt.u32.totalorder %s968_s13, %s963_s17 }
  0x4e   : > { %p972_p5 = scmp.lt.u32.totalorder %s963_s17, %s1273_s15 }
  0x4f   : > { %p966_p7 = pnand %p965_p3, %p964_p2  ;;  %p971_p13 = por %p970_p0, %p969_p9 }
  0x51   : > { %p967_p8 = pneg %p966_p7  ;;  %p973_p1 = por %p972_p5, %p971_p13 }
  0x53   : > { %p974_p6 = pnand %p973_p1, %p967_p8 }
  0x55   : > { %977 = shalt.err (!%p974_p6)
}
  0x56   : > { %s978_s21 = scalar_lea.vmem %s1277_s12, 512  ;;  %s1089_s29 = smov [#allocation5]  }
  0x57   : > { %p979_p11 = scmp.ne.s32.totalorder %s1277_s12, %s978_s21  ;;  %s983_s30 = sshll.u32 %s1089_s29, 4  ;;  %s984_s30 = int_to_ptr.vmem [resolvable:$false] %s983_s30 }
  0x58   : > { %s985_s28 = scalar_lea.vmem %s984_s30, 1024  ;;  %p986_p7 = scmp.lt.s32.totalorder %s1277_s12, %s984_s30 }
  0x59   : > { %p981_p10 = pnand %p979_p11, %p965_p3  ;;  %p987_p9 = scmp.lt.s32.totalorder %s985_s28, %s978_s21 }
  0x5b   : > { %p982_p2 = pneg %p981_p10  ;;  %p988_p0 = por %p987_p9, %p986_p7 }
  0x5d   : > { %p989_p13 = pnand %p988_p0, %p982_p2 }
  0x5f   : > { %992 = shalt.err (!%p989_p13)
}
  0x60   : > { %s1090_s17 = smov 256   ;;  %s1430_s13 = smov 128  }
  0x61   : > { %838 = dma.hbm_to_vmem [thread:$0]  (!%p1429_p4), %s1273_s15, 512, %s1277_s12, %s1283_s20, %s1090_s17, %s1430_s13, %s1088_s18  }
  0x62   : > { %s1431_s11 = sadd.s32 1, %s1071_s23  ;;  %p1432_p3 = scmp.ne.s32.totalorder %s1425_s10, 0 }
  0x63   : > { %s1318_s16 = scalar_select %p1279_p12, %s1071_s23, %s1431_s11  }
  0x64   : > { %298 = sbr.rel (%p1432_p3) target bundleno = 587 (0x24b), region = 44  ;;  %p1433_p8 = scmp.eq.s32.totalorder (!%p1432_p3), %s1161_s27, 0 }
  0x6b   : > { %1046 = dma.done.wait (%p1433_p8), [#allocation3], 32   ;;  %p1434_p5 = pmov %p1433_p8 }
  0x6c   : > { %s304_s14 = sand.u32 1, %s1161_s27   ;;  %s1328_s21 = sand.u32 1, %s1067_s22  }
  0x6d   : > { %1048 = vsyncadd (%p1434_p5), [#allocation3], 4294967264  ;;  %s707_s18 = sshll.u32 %s1328_s21, 5  ;;  %s305_s15 = scalar_lea.sflag [#allocation6], %s304_s14 }
  0x6e   : > { %s308_s12 = scalar_lea.vmem [#allocation5], %s707_s18  ;;  %p1435_p12 = scmp.ne.s32.totalorder %s1421_s7, 0 }
  0x70   : > { %1050 = dma.done.wait (%p1435_p12), %s305_s15, 512  }
  0x71   : > { %1052 = vsyncadd (%p1435_p12), %s305_s15, 4294966784  ;;  %p1436_p4 = pmov %p1434_p5 }
  0x73   : > { %1054 = dma.done.wait (%p1436_p4), [#allocation6], 2048   ;;  %p1437_p1 = pmov %p1436_p4 }
  0x74   : > { %v1091_v0 = vmov 0.0|0.0   ;;  %vm1092_vm0 = vmmov 0   ;;  %v1093_v1 = vmov 0.0   ;;  %v360_v2 = vld [vmem:[%s308_s12] sm:$0xff]  ;;  %v361_v3 = vld [vmem:[%s308_s12 + $0x8] sm:$0xff]  ;;  %v362_v4 = vld [vmem:[%s308_s12 + $0x10] sm:$0xff] }
  0x75   : > { %1056 = vsyncadd (%p1437_p1), [#allocation6], 4294965248  ;;  %786 = vmatprep.subr.bf16.mxu0 %v1091_v0  ;;  %748 = vmatprep.mubr.msk.f32.mxu0 %vm1092_vm0, %v1093_v1  ;;  %v787_v5 = vpack.c.bf16 %v361_v3, %v360_v2  ;;  %v363_v6 = vld [vmem:[%s308_s12 + $0x18] sm:$0xff]  ;;  %v446_v7 = vld [vmem:[#allocation7] sm:$0xff]  ;;  %vm371_vm1 = vcmask 261120   ;;  %p350_p6 = scmp.lt.s32.totalorder %s1075_s24, 1 }
  0x76   : > { %792 = vmatprep.subr.bf16.mxu1 %v1091_v0  ;;  %783 = vmatprep.mubr.msk.f32.mxu1 %vm1092_vm0, %v1093_v1  ;;  %v447_v8 = vld [vmem:[#allocation7 + $0x8] sm:$0xff]  ;;  %v448_v9 = vld [vmem:[#allocation7 + $0x10] sm:$0xff]  ;;  %v449_v10 = vld [vmem:[#allocation7 + $0x18] sm:$0xff]  ;;  %v790_v11 = vpack.c.bf16 %v363_v6, %v362_v4  ;;  %s709_s20 = sshll.u32 %s1328_s21, 1  ;;  %s715_s14 = sshll.u32 %s1075_s24, 5 }
  0x77   : > { %788 = vmatpush3.bf16.msra.mxu0 %v787_v5  ;;  %v793_v12 = vpack.c.bf16 %v447_v8, %v446_v7  ;;  %v796_v13 = vpack.c.bf16 %v449_v10, %v448_v9  ;;  %v450_v14 = vld [vmem:[#allocation7 + $0x20] sm:$0xff]  ;;  %v451_v15 = vld [vmem:[#allocation7 + $0x28] sm:$0xff]  ;;  %v359_v16 = vld [vmem:[#allocation2] sm:$0x3]  ;;  %s351_s27 = scalar_select %p350_p6, %s1075_s24, 1 }
  0x78   : > { %789 = vmatprep.subr.bf16.mxu0 %v1091_v0  ;;  %v799_v17 = vpack.c.bf16 %v451_v15, %v450_v14  ;;  %v452_v18 = vld [vmem:[#allocation7 + $0x30] sm:$0xff]  ;;  %v453_v19 = vld [vmem:[#allocation7 + $0x38] sm:$0xff]  ;;  %v454_v21 = vld [vmem:[#allocation7 + $0x40] sm:$0xff]  ;;  %s349_s18 = scalar_lea.vmem [#allocation8], %s709_s20  ;;  %s1355_s10 = scalar_lea.hbm %s1410_s6, %s715_s14 }
  0x79   : > { %794 = vmatpush3.bf16.msra.mxu1 %v793_v12  ;;  %v802_v20 = vpack.c.bf16 %v453_v19, %v452_v18  ;;  %v455_v22 = vld [vmem:[#allocation7 + $0x48] sm:$0xff]  ;;  %v456_v24 = vld [vmem:[#allocation7 + $0x50] sm:$0xff]  ;;  %v457_v25 = vld [vmem:[#allocation7 + $0x58] sm:$0xff]  ;;  %s352_s19 = scalar_lea.vmem %s1406_s2, %s351_s27  ;;  %s355_s28 = scalar_lea.vmem %s1408_s4, %s351_s27 }
  0x7a   : > { %795 = vmatprep.subr.bf16.mxu1 %v1091_v0  ;;  %v805_v23 = vpack.c.bf16 %v455_v22, %v454_v21  ;;  %v808_v26 = vpack.c.bf16 %v457_v25, %v456_v24  ;;  %v458_v27 = vld [vmem:[#allocation7 + $0x60] sm:$0xff]  ;;  %v459_v28 = vld [vmem:[#allocation7 + $0x68] sm:$0xff]  ;;  %v460_v30 = vld [vmem:[#allocation7 + $0x70] sm:$0xff]  ;;  %s358_s11 = scalar_lea.vmem %s1409_s5, %s351_s27  ;;  %s567_s15 = sshll.u32 %s349_s18, 4  ;;  %s1357_s15 = int_to_ptr.vmem [resolvable:$true] %s567_s15 }
  0x7b   : > { %791 = vmatpush3.bf16.msra.mxu0 %v790_v11  ;;  %v811_v29 = vpack.c.bf16 %v459_v28, %v458_v27  ;;  %v461_v31 = vld [vmem:[#allocation7 + $0x78] sm:$0xff]  ;;  %s552_s27 = scalar_lea.sflag [#allocation4], %s1328_s21  ;;  %p1438_p10 = scmp.ne.s32.totalorder %s1422_s8, 0 }
  0x7c   : > { %v814_v32 = vpack.c.bf16 %v461_v31, %v460_v30  ;;  %v710_v33 = vld [vmem:[%s352_s19] ss:$0 sm:$0xff]  ;;  %s993_s19 = scalar_lea.vmem %s1357_s15, 32  ;;  %s1094_s24 = smov [#allocation8]  }
  0x7d   : > { %797 = vmatpush3.bf16.msra.mxu1 %v796_v13  ;;  %v712_v42 = vld [vmem:[%s355_s28] ss:$0 sm:$0xff]  ;;  %p994_p11 = scmp.ne.s32.totalorder %s1357_s15, %s993_s19  ;;  %s997_s20 = sshll.u32 %s1094_s24, 4  ;;  %s998_s20 = int_to_ptr.vmem [resolvable:$false] %s997_s20 }
  0x7e   : > { %749 = vmatmul.mubr.msk.f32.vlgmr.msra.gmra.mrb[0].mxu0 %vm371_vm1, %v359_v16  ;;  %798 = vmatprep.subr.bf16.mxu1 %v1091_v0  ;;  %v713_v44 = vld [vmem:[%s358_s11] ss:$0 sm:$0xff]  ;;  %s999_s29 = scalar_lea.vmem %s998_s20, 64  ;;  %p1000_p9 = scmp.lt.s32.totalorder %s1357_s15, %s998_s20 }
  0x7f   : > { %p995_p2 = pnand %p994_p11, %p1438_p10  ;;  %p1001_p0 = scmp.lt.s32.totalorder %s999_s29, %s993_s19 }
  0x81   : > { %800 = vmatpush3.bf16.msra.mxu1 %v799_v17  ;;  %p996_p7 = pneg %p995_p2  ;;  %p1002_p13 = por %p1001_p0, %p1000_p9 }
  0x82   : > { %801 = vmatprep.subr.bf16.mxu1 %v1091_v0 }
  0x83   : > { %p1003_p3 = pnand %p1002_p13, %p996_p7 }
  0x85   : > { %803 = vmatpush3.bf16.msra.mxu1 %v802_v20 }
  0x86   : > { %804 = vmatprep.subr.bf16.mxu1 %v1091_v0 }
  0x89   : > { %806 = vmatpush3.bf16.msra.mxu1 %v805_v23 }
  0x8a   : > { %807 = vmatprep.subr.bf16.mxu1 %v1091_v0 }
  0x8d   : > { %809 = vmatpush3.bf16.msra.mxu1 %v808_v26 }
  0x8e   : > { %810 = vmatprep.subr.bf16.mxu1 %v1091_v0 }
  0x91   : > { %812 = vmatpush3.bf16.msra.mxu1 %v811_v29 }
  0x92   : > { %813 = vmatprep.subr.bf16.mxu1 %v1091_v0 }
  0x95   : > { %815 = vmatpush3.bf16.msra.mxu1 %v814_v32 }
 0x151   : > { %v441_v34 = vpop.f32.mrb[0].mxu0 }
 0x152   : > { %v442_v35 = vadd.f32 %v710_v33, %v441_v34  ;;  %v750_v36 = vpop.f32.mrb[1].mxu0 }
 0x154   : > { %v445_v37 = vmul.f32 %v442_v35, %v442_v35 }
 0x156   : > { %784 = vmatmul.mubr.f32.vlgmr.msra.gmra.mrb[0].mxu1 %v445_v37 }
 0x229   : > { %v528_v38 = vpop.f32.mrb[0].mxu1 }
 0x22a   : > { %v529_v39 = vadd.f32 1e-09, %v528_v38  ;;  %v785_v40 = vpop.f32.mrb[1].mxu1 }
 0x22c   : > { %905 = vrsqrt.f32 %v529_v39 }
 0x236   : > { %v906_v41 = vpop.eup %905 }
 0x237   : > { %v533_v43 = vmul.f32 %v906_v41, %v442_v35 }
 0x239   : > { %v541_v45 = vmul.f32 %v712_v42, %v533_v43 }
 0x23b   : > { %v549_v46 = vadd.f32 %v713_v44, %v541_v45 }
 0x23d   : > { %550 = vst [vmem:[%s349_s18] sm:$0x3] %v549_v46 }
 0x23e   : > { %1006 = shalt.err (!%p1003_p3)
}
 0x23f   : > { %s1007_s21 = scalar_lea.hbm %s1355_s10, 32  ;;  %s1011_s17 = scalar_lea.hbm %s1410_s6, 64 }
 0x240   : > { %p1008_p8 = scmp.ne.s32.totalorder %s1355_s10, %s1007_s21  ;;  %p1012_p4 = scmp.lt.u32.totalorder %s1355_s10, %s1410_s6 }
 0x241   : > { %p1013_p1 = scmp.lt.u32.totalorder %s1011_s17, %s1007_s21  ;;  %p1015_p11 = scmp.lt.u32.totalorder %s1007_s21, %s1355_s10 }
 0x242   : > { %p1009_p5 = pnand %p1008_p8, %p1438_p10 }
 0x243   : > { %p1014_p6 = por %p1013_p1, %p1012_p4 }
 0x244   : > { %p1010_p12 = pneg %p1009_p5 }
 0x245   : > { %p1016_p2 = por %p1015_p11, %p1014_p6 }
 0x247   : > { %p1017_p7 = pnand %p1016_p2, %p1010_p12 }
 0x249   : > { %1020 = shalt.err (!%p1017_p7)
}
 0x24a   : > { %826 = dma.vmem_to_hbm [thread:$0]  (%p1438_p10), %s1357_s15, 32, %s1355_s10, %s552_s27  }
 0x24b PF: > { %s1439_s14 = sld [smem:[#allocation13_spill]]  ;;  %s1440_s18 = sld [smem:[#allocation14_spill]] }
 0x24c   : > { %p1442_p0 = scmp.ge.s32.totalorder %s1083_s26, 2 }
 0x251   : > { %s579_s12 = sand.u32 1, %s1439_s14   ;;  %p1441_p9 = scmp.ne.s32.totalorder %s1440_s18, 0 }
 0x252   : > { %s580_s7 = scalar_lea.sflag [#allocation4], %s579_s12 }
 0x253   : > { %p840_p13 = pnand %p1442_p0, %p1441_p9 }
 0x255   : > { %1058 = dma.done.wait (!%p840_p13), %s580_s7, 32  }
 0x256   : > { %1060 = vsyncadd (!%p840_p13), %s580_s7, 4294967264  ;;  %s23_s26 = sadd.s32 1, %s1083_s26   ;;  %s1443_s21 = smov %s1067_s22 }
 0x257   : > { %p20_p3 = scmp.ge.s32.totalorder %s23_s26, 4   ;;  %s1444_s22 = smov %s1071_s23 }
 0x258   : > { %s1445_s23 = smov %s1318_s16  ;;  %s1446_s24 = smov %s1079_s25 }
 0x259   : > { %s1447_s25 = smov %s1449_s9  ;;  %22 = sbr.rel (!%p20_p3) target bundleno = 7 (0x7), region = 108 }
 0x260   :  { %585 = vsyncpa [#allocation3], 1 }
 0x261   :  { %587 = vsyncpa [#allocation3 + $0x1], 1 }
 0x262   :  { %588 = vsyncpa [#allocation6], 1 }
 0x263   :  { %590 = vsyncpa [#allocation6 + $0x1], 1 }
 0x264   :  { %591 = vsyncpa [#allocation4], 1 }
 0x265   :  { %593 = vsyncpa [#allocation4 + $0x1], 1 }

</bundles_post_ra>
